<compile_context>
chip_gen: v7x
topology: tpu7x:2x2x1
jax: 0.10.0
libtpu: 0.0.40
codegen_flags: <defaults>
</compile_context>

<pallas_src>
import functools

import jax
import jax.numpy as jnp
from jax import lax
from jax.experimental import pallas as pl
from jax.experimental.pallas import tpu as pltpu


def _round_up(x, m):
    return ((x + m - 1) // m) * m


def _fused_textcnn_kernel(x_ref, w_ref, b_ref, o_ref, *, filter_widths, seq_len,
                          filter_size, l_max, max_fw):
    # x_ref: (TB, S_pad, E) bf16   -- TB batch rows of (zero padded) embeddings
    # w_ref: (max_fw*E, F_pad) bf16 -- all conv branches packed column-wise
    # b_ref: (1, F_pad) f32         -- packed biases
    # o_ref: (TB, F_pad) f32        -- concatenated max-pooled features
    tb = x_ref.shape[0]
    f_pad = o_ref.shape[1]
    w = w_ref[...]
    bias = b_ref[...]

    # Valid-time mask per output column (filter widths are compile-time constants).
    t_idx = lax.broadcasted_iota(jnp.int32, (l_max, f_pad), 0)
    f_idx = lax.broadcasted_iota(jnp.int32, (l_max, f_pad), 1)
    valid = None
    for j, fw in enumerate(filter_widths):
        l_j = seq_len - fw + 1
        in_branch = (f_idx >= j * filter_size) & (f_idx < (j + 1) * filter_size)
        cond = in_branch & (t_idx < l_j)
        valid = cond if valid is None else (valid | cond)

    rows = []
    for b in range(tb):  # static unroll; each iteration is one 2-D MXU matmul
        xb = x_ref[b]                                                # (S_pad, E)
        # In-register im2col: window shift k occupies lanes [k*E, (k+1)*E).
        xb_unf = jnp.concatenate(
            [xb[k:k + l_max, :] for k in range(max_fw)], axis=-1)    # (L_max, max_fw*E)
        s = jnp.dot(xb_unf, w, preferred_element_type=jnp.float32)   # (L_max, F_pad)
        s = jnp.maximum(s + bias, 0.0)                               # bias + ReLU
        s = jnp.where(valid, s, 0.0)                                 # mask padded times
        rows.append(jnp.max(s, axis=0, keepdims=True))               # max_pool1d over time
    o_ref[...] = jnp.concatenate(rows, axis=0).astype(o_ref.dtype)   # (TB, F_pad)


def encoder_cnn_forward(input_var, emb_table, conv_weights, conv_biases,
                        filter_widths, *, batch_tile=8):
    """Replicates EncoderCNN.forward (eval mode, input_dropout_p=0)."""
    # nn.Embedding lookup (plain-JAX gather); nn.Dropout(p=0) in eval is identity.
    # TODO(synk): the gather could be fused into the kernel via scalar-prefetched
    # token ids + pl.Element row indexing to avoid one HBM round trip of `embedded`.
    embedded = jnp.take(emb_table, input_var, axis=0)                # (B, S, E) f32
    B, S, E = embedded.shape
    F = conv_weights[0].shape[0]
    nb = len(filter_widths)
    max_fw = max(filter_widths)
    min_fw = min(filter_widths)
    l_max = S - min_fw + 1
    s_pad = l_max + max_fw - 1           # sequence length incl. window overhang
    f_total = nb * F
    f_pad = _round_up(f_total, 128)      # lane-dense output block
    k_pack = max_fw * E

    tb = batch_tile
    b_pad = _round_up(B, tb)

    # bf16 activations: halves HBM/DMA bytes for the only large input.
    x = jnp.pad(embedded, ((0, b_pad - B), (0, s_pad - S), (0, 0))).astype(jnp.bfloat16)

    # Pack every conv branch into one matmul matrix + one bias row.
    # Row index k*E + e  <->  PyTorch Conv2d weight element W[f, 0, k, e].
    w_pack = jnp.zeros((k_pack, f_pad), jnp.float32)
    b_pack = jnp.zeros((1, f_pad), jnp.float32)
    for j, (fw, W, b) in enumerate(zip(filter_widths, conv_weights, conv_biases)):
        wj = jnp.transpose(W[:, 0, :, :], (1, 2, 0)).reshape(fw * E, F)  # (fw*E, F)
        w_pack = w_pack.at[:fw * E, j * F:(j + 1) * F].set(wj)
        b_pack = b_pack.at[0, j * F:(j + 1) * F].set(b)
    w_pack = w_pack.astype(jnp.bfloat16)

    kernel = functools.partial(
        _fused_textcnn_kernel,
        filter_widths=tuple(filter_widths), seq_len=S, filter_size=F,
        l_max=l_max, max_fw=max_fw)

    out = pl.pallas_call(
        kernel,
        out_shape=jax.ShapeDtypeStruct((b_pad, f_pad), jnp.float32),
        grid=(b_pad // tb,),
        in_specs=[
            pl.BlockSpec((tb, s_pad, E), lambda i: (i, 0, 0)),   # embedded tile
            pl.BlockSpec((k_pack, f_pad), lambda i: (0, 0)),     # resident weights
            pl.BlockSpec((1, f_pad), lambda i: (0, 0)),          # resident bias
        ],
        out_specs=pl.BlockSpec((tb, f_pad), lambda i: (i, 0)),
        compiler_params=pltpu.CompilerParams(
            dimension_semantics=("parallel",)),
    )(x, w_pack, b_pack)

    return out[:B, :f_total]


def encoder_cnn_reference(input_var, emb_table, conv_weights, conv_biases, filter_widths):
    """Pure-JAX f32 reference of EncoderCNN.forward (for correctness check)."""
    embedded = jnp.take(emb_table, input_var, axis=0)
    B, S, E = embedded.shape
    outs = []
    for fw, W, b in zip(filter_widths, conv_weights, conv_biases):
        L = S - fw + 1
        windows = jnp.stack([embedded[:, k:k + L, :] for k in range(fw)], axis=2)
        x_unf = windows.reshape(B, L, fw * E)
        w_mat = W.reshape(W.shape[0], fw * E).T
        s = jnp.maximum(x_unf @ w_mat + b, 0.0)
        outs.append(jnp.max(s, axis=1))
    return jnp.concatenate(outs, axis=1)


if __name__ == "__main__":
    # Small shapes consistent with the module.
    vocab_size = 50
    embedding_size = 32
    filter_size = 16          # output channels per conv branch
    filters_str = "2,3,4"     # conv kernel heights
    batch = 2
    seq = 8

    filter_widths = [int(x) for x in filters_str.split(",")]

    key = jax.random.PRNGKey(0)
    k_emb, k_ids, *k_convs = jax.random.split(key, 2 + len(filter_widths))

    emb_table = jax.random.normal(k_emb, (vocab_size, embedding_size), dtype=jnp.float32) * 0.1
    input_var = jax.random.randint(k_ids, (batch, seq), 0, vocab_size, dtype=jnp.int32)

    conv_weights, conv_biases = [], []
    for i, fw in enumerate(filter_widths):
        kw, kb = jax.random.split(k_convs[i])
        # Conv2d(1, filter_size, (fw, embedding_size)) weight shape: (F, 1, fw, E)
        w = jax.random.normal(kw, (filter_size, 1, fw, embedding_size), dtype=jnp.float32) * 0.05
        b = jax.random.normal(kb, (filter_size,), dtype=jnp.float32) * 0.05
        conv_weights.append(w)
        conv_biases.append(b)

    out = encoder_cnn_forward(input_var, emb_table, conv_weights, conv_biases, filter_widths)
    out = jax.block_until_ready(out)
    assert out.shape == (batch, filter_size * len(filter_widths)), out.shape

    ref = encoder_cnn_reference(input_var, emb_table, conv_weights, conv_biases, filter_widths)
    err = float(jnp.max(jnp.abs(out - ref)))
    assert err < 2e-2, f"max abs err {err}"

    print("KERNEL_OK")
</pallas_src>

<mosaic_0001>
module attributes {stable_mosaic.version = 11 : i64} {
  func.func @_fused_textcnn_kernel(%arg0: i32, %arg1: memref<8x10x32xbf16, #tpu.memory_space<vmem>>, %arg2: memref<128x128xbf16, #tpu.memory_space<vmem>>, %arg3: memref<1x128xf32, #tpu.memory_space<vmem>>, %arg4: memref<8x128xf32, #tpu.memory_space<vmem>>) attributes {dimension_semantics = [#tpu.dimension_semantics<parallel>], iteration_bounds = array<i64: 1>, scalar_prefetch = 0 : i64, scratch_operands = 0 : i64, tpu.core_type = #tpu.core_type<tc>, window_params = [{transform_indices = @transform_0, window_bounds = array<i64: 8, 10, 32>}, {pipeline_mode = #tpu.pipeline_mode<synchronous>, transform_indices = @transform_1, window_bounds = array<i64: 128, 128>}, {pipeline_mode = #tpu.pipeline_mode<synchronous>, transform_indices = @transform_2, window_bounds = array<i64: 1, 128>}, {transform_indices = @transform_3, window_bounds = array<i64: 8, 128>}]} {
    %c0 = arith.constant 0 : index
    %c0_0 = arith.constant 0 : index
    %0 = vector.load %arg2[%c0, %c0_0] : memref<128x128xbf16, #tpu.memory_space<vmem>>, vector<128x128xbf16>
    %c0_1 = arith.constant 0 : index
    %c0_2 = arith.constant 0 : index
    %1 = vector.load %arg3[%c0_1, %c0_2] : memref<1x128xf32, #tpu.memory_space<vmem>>, vector<1x128xf32>
    %2 = tpu.iota {dimensions = array<i32: 0>} : vector<7x128xi32>
    %3 = tpu.iota {dimensions = array<i32: 1>} : vector<7x128xi32>
    %c0_i32 = arith.constant 0 : i32
    %4 = vector.broadcast %c0_i32 : i32 to vector<7x128xi32>
    %5 = arith.cmpi sge, %3, %4 : vector<7x128xi32>
    %c16_i32 = arith.constant 16 : i32
    %6 = vector.broadcast %c16_i32 : i32 to vector<7x128xi32>
    %7 = arith.cmpi slt, %3, %6 : vector<7x128xi32>
    %8 = arith.andi %5, %7 : vector<7x128xi1>
    %c7_i32 = arith.constant 7 : i32
    %9 = vector.broadcast %c7_i32 : i32 to vector<7x128xi32>
    %10 = arith.cmpi slt, %2, %9 : vector<7x128xi32>
    %11 = arith.andi %8, %10 : vector<7x128xi1>
    %c16_i32_3 = arith.constant 16 : i32
    %12 = vector.broadcast %c16_i32_3 : i32 to vector<7x128xi32>
    %13 = arith.cmpi sge, %3, %12 : vector<7x128xi32>
    %c32_i32 = arith.constant 32 : i32
    %14 = vector.broadcast %c32_i32 : i32 to vector<7x128xi32>
    %15 = arith.cmpi slt, %3, %14 : vector<7x128xi32>
    %16 = arith.andi %13, %15 : vector<7x128xi1>
    %c6_i32 = arith.constant 6 : i32
    %17 = vector.broadcast %c6_i32 : i32 to vector<7x128xi32>
    %18 = arith.cmpi slt, %2, %17 : vector<7x128xi32>
    %19 = arith.andi %16, %18 : vector<7x128xi1>
    %20 = arith.ori %11, %19 : vector<7x128xi1>
    %c32_i32_4 = arith.constant 32 : i32
    %21 = vector.broadcast %c32_i32_4 : i32 to vector<7x128xi32>
    %22 = arith.cmpi sge, %3, %21 : vector<7x128xi32>
    %c48_i32 = arith.constant 48 : i32
    %23 = vector.broadcast %c48_i32 : i32 to vector<7x128xi32>
    %24 = arith.cmpi slt, %3, %23 : vector<7x128xi32>
    %25 = arith.andi %22, %24 : vector<7x128xi1>
    %c5_i32 = arith.constant 5 : i32
    %26 = vector.broadcast %c5_i32 : i32 to vector<7x128xi32>
    %27 = arith.cmpi slt, %2, %26 : vector<7x128xi32>
    %28 = arith.andi %25, %27 : vector<7x128xi1>
    %29 = arith.ori %20, %28 : vector<7x128xi1>
    %c0_5 = arith.constant 0 : index
    %c0_6 = arith.constant 0 : index
    %c0_7 = arith.constant 0 : index
    %30 = vector.load %arg1[%c0_5, %c0_6, %c0_7] : memref<8x10x32xbf16, #tpu.memory_space<vmem>>, vector<1x10x32xbf16>
    %31 = vector.shape_cast %30 : vector<1x10x32xbf16> to vector<10x32xbf16>
    %32 = vector.extract_strided_slice %31 {offsets = [0, 0], sizes = [7, 32], strides = [1, 1]} : vector<10x32xbf16> to vector<7x32xbf16>
    %33 = vector.extract_strided_slice %31 {offsets = [1, 0], sizes = [7, 32], strides = [1, 1]} : vector<10x32xbf16> to vector<7x32xbf16>
    %34 = vector.extract_strided_slice %31 {offsets = [2, 0], sizes = [7, 32], strides = [1, 1]} : vector<10x32xbf16> to vector<7x32xbf16>
    %35 = vector.extract_strided_slice %31 {offsets = [3, 0], sizes = [7, 32], strides = [1, 1]} : vector<10x32xbf16> to vector<7x32xbf16>
    %36 = tpu.concatenate %32, %33, %34, %35 in 1 : vector<7x32xbf16>, vector<7x32xbf16>, vector<7x32xbf16>, vector<7x32xbf16> -> vector<7x128xbf16>
    %cst = arith.constant dense<0.000000e+00> : vector<7x128xf32>
    %37 = tpu.matmul %36, %0, %cst {dimension_numbers = #tpu.dot_dimension_numbers<[1], [0], [0], [1], [0, 0, 1, 1], [], []>} : vector<7x128xbf16>, vector<128x128xbf16>, vector<7x128xf32> -> vector<7x128xf32>
    %38 = vector.broadcast %1 : vector<1x128xf32> to vector<7x128xf32>
    %39 = arith.addf %37, %38 : vector<7x128xf32>
    %cst_8 = arith.constant 0.000000e+00 : f32
    %40 = vector.broadcast %cst_8 : f32 to vector<7x128xf32>
    %41 = arith.maximumf %39, %40 : vector<7x128xf32>
    %cst_9 = arith.constant 0.000000e+00 : f32
    %42 = vector.broadcast %cst_9 : f32 to vector<7x128xf32>
    %43 = arith.select %29, %41, %42 : vector<7x128xi1>, vector<7x128xf32>
    %cst_10 = arith.constant dense<0xFF800000> : vector<128xf32>
    %44 = vector.multi_reduction <maximumf>, %43, %cst_10 [0] : vector<7x128xf32> to vector<128xf32>
    %45 = vector.shape_cast %44 : vector<128xf32> to vector<1x128xf32>
    %c1 = arith.constant 1 : index
    %c0_11 = arith.constant 0 : index
    %c0_12 = arith.constant 0 : index
    %46 = vector.load %arg1[%c1, %c0_11, %c0_12] : memref<8x10x32xbf16, #tpu.memory_space<vmem>>, vector<1x10x32xbf16>
    %47 = vector.shape_cast %46 : vector<1x10x32xbf16> to vector<10x32xbf16>
    %48 = vector.extract_strided_slice %47 {offsets = [0, 0], sizes = [7, 32], strides = [1, 1]} : vector<10x32xbf16> to vector<7x32xbf16>
    %49 = vector.extract_strided_slice %47 {offsets = [1, 0], sizes = [7, 32], strides = [1, 1]} : vector<10x32xbf16> to vector<7x32xbf16>
    %50 = vector.extract_strided_slice %47 {offsets = [2, 0], sizes = [7, 32], strides = [1, 1]} : vector<10x32xbf16> to vector<7x32xbf16>
    %51 = vector.extract_strided_slice %47 {offsets = [3, 0], sizes = [7, 32], strides = [1, 1]} : vector<10x32xbf16> to vector<7x32xbf16>
    %52 = tpu.concatenate %48, %49, %50, %51 in 1 : vector<7x32xbf16>, vector<7x32xbf16>, vector<7x32xbf16>, vector<7x32xbf16> -> vector<7x128xbf16>
    %cst_13 = arith.constant dense<0.000000e+00> : vector<7x128xf32>
    %53 = tpu.matmul %52, %0, %cst_13 {dimension_numbers = #tpu.dot_dimension_numbers<[1], [0], [0], [1], [0, 0, 1, 1], [], []>} : vector<7x128xbf16>, vector<128x128xbf16>, vector<7x128xf32> -> vector<7x128xf32>
    %54 = vector.broadcast %1 : vector<1x128xf32> to vector<7x128xf32>
    %55 = arith.addf %53, %54 : vector<7x128xf32>
    %cst_14 = arith.constant 0.000000e+00 : f32
    %56 = vector.broadcast %cst_14 : f32 to vector<7x128xf32>
    %57 = arith.maximumf %55, %56 : vector<7x128xf32>
    %cst_15 = arith.constant 0.000000e+00 : f32
    %58 = vector.broadcast %cst_15 : f32 to vector<7x128xf32>
    %59 = arith.select %29, %57, %58 : vector<7x128xi1>, vector<7x128xf32>
    %cst_16 = arith.constant dense<0xFF800000> : vector<128xf32>
    %60 = vector.multi_reduction <maximumf>, %59, %cst_16 [0] : vector<7x128xf32> to vector<128xf32>
    %61 = vector.shape_cast %60 : vector<128xf32> to vector<1x128xf32>
    %c2 = arith.constant 2 : index
    %c0_17 = arith.constant 0 : index
    %c0_18 = arith.constant 0 : index
    %62 = vector.load %arg1[%c2, %c0_17, %c0_18] : memref<8x10x32xbf16, #tpu.memory_space<vmem>>, vector<1x10x32xbf16>
    %63 = vector.shape_cast %62 : vector<1x10x32xbf16> to vector<10x32xbf16>
    %64 = vector.extract_strided_slice %63 {offsets = [0, 0], sizes = [7, 32], strides = [1, 1]} : vector<10x32xbf16> to vector<7x32xbf16>
    %65 = vector.extract_strided_slice %63 {offsets = [1, 0], sizes = [7, 32], strides = [1, 1]} : vector<10x32xbf16> to vector<7x32xbf16>
    %66 = vector.extract_strided_slice %63 {offsets = [2, 0], sizes = [7, 32], strides = [1, 1]} : vector<10x32xbf16> to vector<7x32xbf16>
    %67 = vector.extract_strided_slice %63 {offsets = [3, 0], sizes = [7, 32], strides = [1, 1]} : vector<10x32xbf16> to vector<7x32xbf16>
    %68 = tpu.concatenate %64, %65, %66, %67 in 1 : vector<7x32xbf16>, vector<7x32xbf16>, vector<7x32xbf16>, vector<7x32xbf16> -> vector<7x128xbf16>
    %cst_19 = arith.constant dense<0.000000e+00> : vector<7x128xf32>
    %69 = tpu.matmul %68, %0, %cst_19 {dimension_numbers = #tpu.dot_dimension_numbers<[1], [0], [0], [1], [0, 0, 1, 1], [], []>} : vector<7x128xbf16>, vector<128x128xbf16>, vector<7x128xf32> -> vector<7x128xf32>
    %70 = vector.broadcast %1 : vector<1x128xf32> to vector<7x128xf32>
    %71 = arith.addf %69, %70 : vector<7x128xf32>
    %cst_20 = arith.constant 0.000000e+00 : f32
    %72 = vector.broadcast %cst_20 : f32 to vector<7x128xf32>
    %73 = arith.maximumf %71, %72 : vector<7x128xf32>
    %cst_21 = arith.constant 0.000000e+00 : f32
    %74 = vector.broadcast %cst_21 : f32 to vector<7x128xf32>
    %75 = arith.select %29, %73, %74 : vector<7x128xi1>, vector<7x128xf32>
    %cst_22 = arith.constant dense<0xFF800000> : vector<128xf32>
    %76 = vector.multi_reduction <maximumf>, %75, %cst_22 [0] : vector<7x128xf32> to vector<128xf32>
    %77 = vector.shape_cast %76 : vector<128xf32> to vector<1x128xf32>
    %c3 = arith.constant 3 : index
    %c0_23 = arith.constant 0 : index
    %c0_24 = arith.constant 0 : index
    %78 = vector.load %arg1[%c3, %c0_23, %c0_24] : memref<8x10x32xbf16, #tpu.memory_space<vmem>>, vector<1x10x32xbf16>
    %79 = vector.shape_cast %78 : vector<1x10x32xbf16> to vector<10x32xbf16>
    %80 = vector.extract_strided_slice %79 {offsets = [0, 0], sizes = [7, 32], strides = [1, 1]} : vector<10x32xbf16> to vector<7x32xbf16>
    %81 = vector.extract_strided_slice %79 {offsets = [1, 0], sizes = [7, 32], strides = [1, 1]} : vector<10x32xbf16> to vector<7x32xbf16>
    %82 = vector.extract_strided_slice %79 {offsets = [2, 0], sizes = [7, 32], strides = [1, 1]} : vector<10x32xbf16> to vector<7x32xbf16>
    %83 = vector.extract_strided_slice %79 {offsets = [3, 0], sizes = [7, 32], strides = [1, 1]} : vector<10x32xbf16> to vector<7x32xbf16>
    %84 = tpu.concatenate %80, %81, %82, %83 in 1 : vector<7x32xbf16>, vector<7x32xbf16>, vector<7x32xbf16>, vector<7x32xbf16> -> vector<7x128xbf16>
    %cst_25 = arith.constant dense<0.000000e+00> : vector<7x128xf32>
    %85 = tpu.matmul %84, %0, %cst_25 {dimension_numbers = #tpu.dot_dimension_numbers<[1], [0], [0], [1], [0, 0, 1, 1], [], []>} : vector<7x128xbf16>, vector<128x128xbf16>, vector<7x128xf32> -> vector<7x128xf32>
    %86 = vector.broadcast %1 : vector<1x128xf32> to vector<7x128xf32>
    %87 = arith.addf %85, %86 : vector<7x128xf32>
    %cst_26 = arith.constant 0.000000e+00 : f32
    %88 = vector.broadcast %cst_26 : f32 to vector<7x128xf32>
    %89 = arith.maximumf %87, %88 : vector<7x128xf32>
    %cst_27 = arith.constant 0.000000e+00 : f32
    %90 = vector.broadcast %cst_27 : f32 to vector<7x128xf32>
    %91 = arith.select %29, %89, %90 : vector<7x128xi1>, vector<7x128xf32>
    %cst_28 = arith.constant dense<0xFF800000> : vector<128xf32>
    %92 = vector.multi_reduction <maximumf>, %91, %cst_28 [0] : vector<7x128xf32> to vector<128xf32>
    %93 = vector.shape_cast %92 : vector<128xf32> to vector<1x128xf32>
    %c4 = arith.constant 4 : index
    %c0_29 = arith.constant 0 : index
    %c0_30 = arith.constant 0 : index
    %94 = vector.load %arg1[%c4, %c0_29, %c0_30] : memref<8x10x32xbf16, #tpu.memory_space<vmem>>, vector<1x10x32xbf16>
    %95 = vector.shape_cast %94 : vector<1x10x32xbf16> to vector<10x32xbf16>
    %96 = vector.extract_strided_slice %95 {offsets = [0, 0], sizes = [7, 32], strides = [1, 1]} : vector<10x32xbf16> to vector<7x32xbf16>
    %97 = vector.extract_strided_slice %95 {offsets = [1, 0], sizes = [7, 32], strides = [1, 1]} : vector<10x32xbf16> to vector<7x32xbf16>
    %98 = vector.extract_strided_slice %95 {offsets = [2, 0], sizes = [7, 32], strides = [1, 1]} : vector<10x32xbf16> to vector<7x32xbf16>
    %99 = vector.extract_strided_slice %95 {offsets = [3, 0], sizes = [7, 32], strides = [1, 1]} : vector<10x32xbf16> to vector<7x32xbf16>
    %100 = tpu.concatenate %96, %97, %98, %99 in 1 : vector<7x32xbf16>, vector<7x32xbf16>, vector<7x32xbf16>, vector<7x32xbf16> -> vector<7x128xbf16>
    %cst_31 = arith.constant dense<0.000000e+00> : vector<7x128xf32>
    %101 = tpu.matmul %100, %0, %cst_31 {dimension_numbers = #tpu.dot_dimension_numbers<[1], [0], [0], [1], [0, 0, 1, 1], [], []>} : vector<7x128xbf16>, vector<128x128xbf16>, vector<7x128xf32> -> vector<7x128xf32>
    %102 = vector.broadcast %1 : vector<1x128xf32> to vector<7x128xf32>
    %103 = arith.addf %101, %102 : vector<7x128xf32>
    %cst_32 = arith.constant 0.000000e+00 : f32
    %104 = vector.broadcast %cst_32 : f32 to vector<7x128xf32>
    %105 = arith.maximumf %103, %104 : vector<7x128xf32>
    %cst_33 = arith.constant 0.000000e+00 : f32
    %106 = vector.broadcast %cst_33 : f32 to vector<7x128xf32>
    %107 = arith.select %29, %105, %106 : vector<7x128xi1>, vector<7x128xf32>
    %cst_34 = arith.constant dense<0xFF800000> : vector<128xf32>
    %108 = vector.multi_reduction <maximumf>, %107, %cst_34 [0] : vector<7x128xf32> to vector<128xf32>
    %109 = vector.shape_cast %108 : vector<128xf32> to vector<1x128xf32>
    %c5 = arith.constant 5 : index
    %c0_35 = arith.constant 0 : index
    %c0_36 = arith.constant 0 : index
    %110 = vector.load %arg1[%c5, %c0_35, %c0_36] : memref<8x10x32xbf16, #tpu.memory_space<vmem>>, vector<1x10x32xbf16>
    %111 = vector.shape_cast %110 : vector<1x10x32xbf16> to vector<10x32xbf16>
    %112 = vector.extract_strided_slice %111 {offsets = [0, 0], sizes = [7, 32], strides = [1, 1]} : vector<10x32xbf16> to vector<7x32xbf16>
    %113 = vector.extract_strided_slice %111 {offsets = [1, 0], sizes = [7, 32], strides = [1, 1]} : vector<10x32xbf16> to vector<7x32xbf16>
    %114 = vector.extract_strided_slice %111 {offsets = [2, 0], sizes = [7, 32], strides = [1, 1]} : vector<10x32xbf16> to vector<7x32xbf16>
    %115 = vector.extract_strided_slice %111 {offsets = [3, 0], sizes = [7, 32], strides = [1, 1]} : vector<10x32xbf16> to vector<7x32xbf16>
    %116 = tpu.concatenate %112, %113, %114, %115 in 1 : vector<7x32xbf16>, vector<7x32xbf16>, vector<7x32xbf16>, vector<7x32xbf16> -> vector<7x128xbf16>
    %cst_37 = arith.constant dense<0.000000e+00> : vector<7x128xf32>
    %117 = tpu.matmul %116, %0, %cst_37 {dimension_numbers = #tpu.dot_dimension_numbers<[1], [0], [0], [1], [0, 0, 1, 1], [], []>} : vector<7x128xbf16>, vector<128x128xbf16>, vector<7x128xf32> -> vector<7x128xf32>
    %118 = vector.broadcast %1 : vector<1x128xf32> to vector<7x128xf32>
    %119 = arith.addf %117, %118 : vector<7x128xf32>
    %cst_38 = arith.constant 0.000000e+00 : f32
    %120 = vector.broadcast %cst_38 : f32 to vector<7x128xf32>
    %121 = arith.maximumf %119, %120 : vector<7x128xf32>
    %cst_39 = arith.constant 0.000000e+00 : f32
    %122 = vector.broadcast %cst_39 : f32 to vector<7x128xf32>
    %123 = arith.select %29, %121, %122 : vector<7x128xi1>, vector<7x128xf32>
    %cst_40 = arith.constant dense<0xFF800000> : vector<128xf32>
    %124 = vector.multi_reduction <maximumf>, %123, %cst_40 [0] : vector<7x128xf32> to vector<128xf32>
    %125 = vector.shape_cast %124 : vector<128xf32> to vector<1x128xf32>
    %c6 = arith.constant 6 : index
    %c0_41 = arith.constant 0 : index
    %c0_42 = arith.constant 0 : index
    %126 = vector.load %arg1[%c6, %c0_41, %c0_42] : memref<8x10x32xbf16, #tpu.memory_space<vmem>>, vector<1x10x32xbf16>
    %127 = vector.shape_cast %126 : vector<1x10x32xbf16> to vector<10x32xbf16>
    %128 = vector.extract_strided_slice %127 {offsets = [0, 0], sizes = [7, 32], strides = [1, 1]} : vector<10x32xbf16> to vector<7x32xbf16>
    %129 = vector.extract_strided_slice %127 {offsets = [1, 0], sizes = [7, 32], strides = [1, 1]} : vector<10x32xbf16> to vector<7x32xbf16>
    %130 = vector.extract_strided_slice %127 {offsets = [2, 0], sizes = [7, 32], strides = [1, 1]} : vector<10x32xbf16> to vector<7x32xbf16>
    %131 = vector.extract_strided_slice %127 {offsets = [3, 0], sizes = [7, 32], strides = [1, 1]} : vector<10x32xbf16> to vector<7x32xbf16>
    %132 = tpu.concatenate %128, %129, %130, %131 in 1 : vector<7x32xbf16>, vector<7x32xbf16>, vector<7x32xbf16>, vector<7x32xbf16> -> vector<7x128xbf16>
    %cst_43 = arith.constant dense<0.000000e+00> : vector<7x128xf32>
    %133 = tpu.matmul %132, %0, %cst_43 {dimension_numbers = #tpu.dot_dimension_numbers<[1], [0], [0], [1], [0, 0, 1, 1], [], []>} : vector<7x128xbf16>, vector<128x128xbf16>, vector<7x128xf32> -> vector<7x128xf32>
    %134 = vector.broadcast %1 : vector<1x128xf32> to vector<7x128xf32>
    %135 = arith.addf %133, %134 : vector<7x128xf32>
    %cst_44 = arith.constant 0.000000e+00 : f32
    %136 = vector.broadcast %cst_44 : f32 to vector<7x128xf32>
    %137 = arith.maximumf %135, %136 : vector<7x128xf32>
    %cst_45 = arith.constant 0.000000e+00 : f32
    %138 = vector.broadcast %cst_45 : f32 to vector<7x128xf32>
    %139 = arith.select %29, %137, %138 : vector<7x128xi1>, vector<7x128xf32>
    %cst_46 = arith.constant dense<0xFF800000> : vector<128xf32>
    %140 = vector.multi_reduction <maximumf>, %139, %cst_46 [0] : vector<7x128xf32> to vector<128xf32>
    %141 = vector.shape_cast %140 : vector<128xf32> to vector<1x128xf32>
    %c7 = arith.constant 7 : index
    %c0_47 = arith.constant 0 : index
    %c0_48 = arith.constant 0 : index
    %142 = vector.load %arg1[%c7, %c0_47, %c0_48] : memref<8x10x32xbf16, #tpu.memory_space<vmem>>, vector<1x10x32xbf16>
    %143 = vector.shape_cast %142 : vector<1x10x32xbf16> to vector<10x32xbf16>
    %144 = vector.extract_strided_slice %143 {offsets = [0, 0], sizes = [7, 32], strides = [1, 1]} : vector<10x32xbf16> to vector<7x32xbf16>
    %145 = vector.extract_strided_slice %143 {offsets = [1, 0], sizes = [7, 32], strides = [1, 1]} : vector<10x32xbf16> to vector<7x32xbf16>
    %146 = vector.extract_strided_slice %143 {offsets = [2, 0], sizes = [7, 32], strides = [1, 1]} : vector<10x32xbf16> to vector<7x32xbf16>
    %147 = vector.extract_strided_slice %143 {offsets = [3, 0], sizes = [7, 32], strides = [1, 1]} : vector<10x32xbf16> to vector<7x32xbf16>
    %148 = tpu.concatenate %144, %145, %146, %147 in 1 : vector<7x32xbf16>, vector<7x32xbf16>, vector<7x32xbf16>, vector<7x32xbf16> -> vector<7x128xbf16>
    %cst_49 = arith.constant dense<0.000000e+00> : vector<7x128xf32>
    %149 = tpu.matmul %148, %0, %cst_49 {dimension_numbers = #tpu.dot_dimension_numbers<[1], [0], [0], [1], [0, 0, 1, 1], [], []>} : vector<7x128xbf16>, vector<128x128xbf16>, vector<7x128xf32> -> vector<7x128xf32>
    %150 = vector.broadcast %1 : vector<1x128xf32> to vector<7x128xf32>
    %151 = arith.addf %149, %150 : vector<7x128xf32>
    %cst_50 = arith.constant 0.000000e+00 : f32
    %152 = vector.broadcast %cst_50 : f32 to vector<7x128xf32>
    %153 = arith.maximumf %151, %152 : vector<7x128xf32>
    %cst_51 = arith.constant 0.000000e+00 : f32
    %154 = vector.broadcast %cst_51 : f32 to vector<7x128xf32>
    %155 = arith.select %29, %153, %154 : vector<7x128xi1>, vector<7x128xf32>
    %cst_52 = arith.constant dense<0xFF800000> : vector<128xf32>
    %156 = vector.multi_reduction <maximumf>, %155, %cst_52 [0] : vector<7x128xf32> to vector<128xf32>
    %157 = vector.shape_cast %156 : vector<128xf32> to vector<1x128xf32>
    %158 = tpu.concatenate %45, %61, %77, %93, %109, %125, %141, %157 in 0 : vector<1x128xf32>, vector<1x128xf32>, vector<1x128xf32>, vector<1x128xf32>, vector<1x128xf32>, vector<1x128xf32>, vector<1x128xf32>, vector<1x128xf32> -> vector<8x128xf32>
    %c0_53 = arith.constant 0 : index
    %c0_54 = arith.constant 0 : index
    %159 = vector.load %arg4[%c0_53, %c0_54] : memref<8x128xf32, #tpu.memory_space<vmem>>, vector<8x128xf32>
    tpu.vector_store %arg4[%c0_53, %c0_54], %158 {strides = array<i32>} : memref<8x128xf32, #tpu.memory_space<vmem>>, vector<8x128xf32>,
    return
  }
  func.func @transform_0(%arg0: i32) -> (i32, i32, i32) {
    %c0_i32 = arith.constant 0 : i32
    %c0_i32_0 = arith.constant 0 : i32
    %c0_i32_1 = arith.constant 0 : i32
    return %arg0, %c0_i32, %c0_i32_0 : i32, i32, i32
  }
  func.func @transform_1(%arg0: i32) -> (i32, i32) {
    %c0_i32 = arith.constant 0 : i32
    %c0_i32_0 = arith.constant 0 : i32
    %c0_i32_1 = arith.constant 0 : i32
    return %c0_i32, %c0_i32_0 : i32, i32
  }
  func.func @transform_2(%arg0: i32) -> (i32, i32) {
    %c0_i32 = arith.constant 0 : i32
    %c0_i32_0 = arith.constant 0 : i32
    %c0_i32_1 = arith.constant 0 : i32
    return %c0_i32, %c0_i32_0 : i32, i32
  }
  func.func @transform_3(%arg0: i32) -> (i32, i32) {
    %c0_i32 = arith.constant 0 : i32
    %c0_i32_0 = arith.constant 0 : i32
    return %arg0, %c0_i32 : i32, i32
  }
}

</mosaic_0001>

<bundles_post_ra>
// kernel: tpu_custom_call.1
= control target key start
LH: loop header
LB: loop body
LE: loop exit
PB: predicated region body
PF: predicated region fallthrough
CT: control target
= control target key end

     0   :  { %v1168_v8 = vmov 0.0   ;;  %s1169_s24 = smov 64   ;;  %s1170_s29 = smov 32   ;;  %s1585_s0 = inlined_call_operand.vmem [shape: bf16[8,10,32], index: 0, kind: input, shape index: {}]   ;;  %s1586_s1 = inlined_call_operand.vmem [shape: bf16[128,128], index: 1, kind: input, shape index: {}]   ;;  %s1587_s2 = inlined_call_operand.vmem [shape: f32[1,128], index: 2, kind: input, shape index: {}]   ;;  %s1588_s3 = inlined_call_operand.hbm [shape: f32[8,128], index: 3, kind: output, shape index: {}]  }
   0x1   :  { %v1197_v0 = vld [vmem:[%s1585_s0] sm:$0xf]  ;;  %v55_v1 = vld [vmem:[%s1585_s0 + $0x4] sm:$0x1]  ;;  %v1206_v3 = vld [vmem:[%s1585_s0 + $0x8] sm:$0xf]  ;;  %954 = vmatprep.subr.bf16.mxu0 %v1168_v8  ;;  %974 = vmatprep.subr.bf16.mxu1 %v1168_v8 }
   0x2   :  { %v844_v2 = vcombine.low %v1197_v0, %v55_v1  ;;  %v843_v4 = vcombine.low %v1197_v0, %v1197_v0  ;;  %v855_v5 = vld [vmem:[%s1585_s0 + $0xc] sm:$0x1]  ;;  %v856_v6 = vcombine.low %v1206_v3, %v1206_v3  ;;  %v1221_v13 = vld [vmem:[%s1585_s0 + $0x10] sm:$0xf]  ;;  %v1226_v17 = vld [vmem:[%s1585_s0 + $0x18] sm:$0xf] }
   0x3   :  { %v857_v7 = vcombine.low %v1206_v3, %v855_v5  ;;  %v860_v24 = vcombine.low %v1221_v13, %v1221_v13  ;;  %v859_v25 = vld [vmem:[%s1585_s0 + $0x14] sm:$0x1]  ;;  %v864_v27 = vcombine.low %v1226_v17, %v1226_v17  ;;  %v1239_v30 = vld [vmem:[%s1586_s1] sm:$0xff]   ;;  %v1253_v40 = vld [vmem:[%s1586_s1 + $0x8] sm:$0xff]   ;;  %s1171_s9 = smov 96  }
   0x4   :  { %v71_v9 = vrot.slane %v844_v2, 1  ;;  %v60_v10 = vshrl.u32 %v843_v4, 16  ;;  %v62_v11 = vshll.u32 %v843_v4, 16  ;;  %v75_v12 = vshrl.u32 %v844_v2, 16  ;;  %v1246_v35 = vld [vmem:[%s1585_s0 + $0x20] sm:$0xf]  ;;  %955 = vmatpush3.bf16.msra.mxu0 %v1239_v30  ;;  %975 = vmatpush3.bf16.msra.mxu1 %v1239_v30 }
   0x5   :  { %v206_v14 = vshrl.u32 %v856_v6, 16  ;;  %v208_v15 = vshll.u32 %v856_v6, 16  ;;  %v78_v16 = vshll.u32 %v844_v2, 16  ;;  %v221_v20 = vshrl.u32 %v857_v7, 16  ;;  %v863_v41 = vld [vmem:[%s1585_s0 + $0x1c] sm:$0x1]  ;;  %956 = vmatprep.subr.bf16.mxu0 %v1168_v8  ;;  %976 = vmatprep.subr.bf16.mxu1 %v1168_v8 }
   0x6   :  { %72 = vrot.lane.b32.xlu0 %v71_v9, %s1169_s24  ;;  %v64_v18 = vrot.slane %v62_v11, 1  ;;  %v77_v19 = vrot.slane %v75_v12, 1  ;;  %v224_v23 = vshll.u32 %v857_v7, 16  ;;  %v296_v29 = vshll.u32 %v860_v24, 16  ;;  %v1269_v50 = vld [vmem:[%s1585_s0 + $0x28] sm:$0xf] }
   0x7   :  { %v210_v21 = vrot.slane %v208_v15, 1  ;;  %v80_v22 = vrot.slane %v78_v16, 2  ;;  %v217_v31 = vrot.slane %v857_v7, 1  ;;  %v294_v32 = vshrl.u32 %v860_v24, 16  ;;  %v1275_v51 = vld [vmem:[%s1586_s1 + $0x10] sm:$0xff]   ;;  %v1286_v56 = vld [vmem:[%s1586_s1 + $0x18] sm:$0xff]  }
   0x8   :  { %v65_v26 = vor.u32 %v64_v18, %v60_v10  ;;  %v861_v33 = vcombine.low %v1221_v13, %v859_v25  ;;  %v384_v34 = vshll.u32 %v864_v27, 16  ;;  %v223_v37 = vrot.slane %v221_v20, 1  ;;  %957 = vmatpush3.bf16.msra.mxu0 %v1253_v40  ;;  %977 = vmatpush3.bf16.msra.mxu1 %v1253_v40  ;;  %v867_v61 = vld [vmem:[%s1585_s0 + $0x24] sm:$0x1]  ;;  %v1298_v62 = vld [vmem:[%s1585_s0 + $0x30] sm:$0xf] }
   0x9   :  { %v211_v28 = vor.u32 %v210_v21, %v206_v14  ;;  %v81_v36 = vor.u32 %v80_v22, %v77_v19  ;;  %v226_v38 = vrot.slane %v224_v23, 2  ;;  %v298_v39 = vrot.slane %v296_v29, 1  ;;  %958 = vmatprep.subr.bf16.mxu0 %v1168_v8  ;;  %978 = vmatprep.subr.bf16.mxu1 %v1168_v8  ;;  %v1308_v10 = vld [vmem:[%s1586_s1 + $0x20] sm:$0xff]  }
   0xa   :  { %66 = vrot.lane.b32.xlu0 %v65_v26, %s1170_s29  ;;  %v382_v43 = vshrl.u32 %v864_v27, 16  ;;  %v386_v44 = vrot.slane %v384_v34, 1  ;;  %v868_v45 = vcombine.low %v1246_v35, %v1246_v35  ;;  %v309_v47 = vshrl.u32 %v861_v33, 16 }
   0xb   :  { %212 = vrot.lane.b32.xlu1 %v211_v28, %s1170_s29  ;;  %v299_v42 = vor.u32 %v298_v39, %v294_v32  ;;  %v227_v46 = vor.u32 %v226_v38, %v223_v37  ;;  %v312_v48 = vshll.u32 %v861_v33, 16  ;;  %v865_v49 = vcombine.low %v1226_v17, %v863_v41 }
   0xc   :  { %v305_v52 = vrot.slane %v861_v33, 1  ;;  %v387_v53 = vor.u32 %v386_v44, %v382_v43  ;;  %v472_v54 = vshll.u32 %v868_v45, 16  ;;  %v872_v55 = vcombine.low %v1269_v50, %v1269_v50  ;;  %959 = vmatpush3.bf16.msra.mxu0 %v1275_v51  ;;  %979 = vmatpush3.bf16.msra.mxu1 %v1275_v51 }
   0xd   :  { %v311_v57 = vrot.slane %v309_v47, 1  ;;  %v314_v58 = vrot.slane %v312_v48, 2  ;;  %v397_v59 = vshrl.u32 %v865_v49, 16  ;;  %v400_v60 = vshll.u32 %v865_v49, 16  ;;  %960 = vmatprep.subr.bf16.mxu0 %v1168_v8  ;;  %980 = vmatprep.subr.bf16.mxu1 %v1168_v8 }
   0xe   :  { %218 = vrot.lane.b32.xlu0 %v217_v31, %s1169_s24  ;;  %v393_v63 = vrot.slane %v865_v49, 1  ;;  %v470_v1 = vshrl.u32 %v868_v45, 16  ;;  %v474_v2 = vrot.slane %v472_v54, 1  ;;  %v560_v4 = vshll.u32 %v872_v55, 16 }
   0xf   :  { %82 = vrot.lane.b32.xlu1 %v81_v36, %s1171_s9  ;;  %v315_v5 = vor.u32 %v314_v58, %v311_v57  ;;  %v399_v6 = vrot.slane %v397_v59, 1  ;;  %v402_v7 = vrot.slane %v400_v60, 2  ;;  %v869_v9 = vcombine.low %v1246_v35, %v867_v61 }
  0x10   :  { %961 = vmatpush3.bf16.msra.mxu0 %v1286_v56 }
  0x12   :  { %300 = vrot.lane.b32.xlu0 %v299_v42, %s1170_s29 }
  0x13   :  { %228 = vrot.lane.b32.xlu1 %v227_v46, %s1171_s9 }
  0x16   :  { %388 = vrot.lane.b32.xlu0 %v387_v53, %s1170_s29 }
  0x17   :  { %306 = vrot.lane.b32.xlu1 %v305_v52, %s1169_s24 }
  0x18   :  { %8 = vsyncpa [#allocation3], 0  ;;  %v871_v11 = vld [vmem:[%s1585_s0 + $0x2c] sm:$0x1]  ;;  %962 = vmatprep.subr.bf16.mxu0 %v1168_v8  ;;  %981 = vmatpush3.bf16.msra.mxu1 %v1286_v56  ;;  %v558_v12 = vshrl.u32 %v872_v55, 16  ;;  %v475_v14 = vor.u32 %v474_v2, %v470_v1  ;;  %v562_v15 = vrot.slane %v560_v4, 1  ;;  %v876_v16 = vcombine.low %v1298_v62, %v1298_v62 }
  0x19   :  { %982 = vmatprep.subr.bf16.mxu1 %v1168_v8  ;;  %v403_v18 = vor.u32 %v402_v7, %v399_v6  ;;  %v485_v19 = vshrl.u32 %v869_v9, 16  ;;  %v488_v20 = vshll.u32 %v869_v9, 16  ;;  %v873_v21 = vcombine.low %v1269_v50, %v871_v11  ;;  %v1324_v22 = vld [vmem:[%s1585_s0 + $0x38] sm:$0xf]  ;;  %963 = vmatpush3.bf16.msra.mxu0 %v1308_v10  ;;  %v1330_v23 = vld [vmem:[%s1586_s1 + $0x28] sm:$0xff]   ;;  %v1347_v33 = vld [vmem:[%s1586_s1 + $0x30] sm:$0xff]  }
  0x1a   :  { %394 = vrot.lane.b32.xlu0 %v393_v63, %s1169_s24  ;;  %964 = vmatprep.subr.bf16.mxu0 %v1168_v8  ;;  %vm1172_vm0 = vmmov 0   ;;  %v481_v24 = vrot.slane %v869_v9, 1  ;;  %v563_v25 = vor.u32 %v562_v15, %v558_v12  ;;  %v648_v26 = vshll.u32 %v876_v16, 16  ;;  %v875_v34 = vld [vmem:[%s1585_s0 + $0x34] sm:$0x1]  ;;  %v1362_v45 = vld [vmem:[%s1586_s1 + $0x38] sm:$0xff]  }
  0x1b   :  { %316 = vrot.lane.b32.xlu1 %v315_v5, %s1171_s9  ;;  %970 = vmatprep.mubr.msk.bf16.mxu0 %vm1172_vm0, %v1168_v8  ;;  %v880_v27 = vcombine.low %v1324_v22, %v1324_v22  ;;  %v487_v28 = vrot.slane %v485_v19, 1  ;;  %v490_v29 = vrot.slane %v488_v20, 2  ;;  %v573_v31 = vshrl.u32 %v873_v21, 16  ;;  %v879_v46 = vld [vmem:[%s1585_s0 + $0x3c] sm:$0x1] }
  0x1c   :  { %983 = vmatpush3.bf16.msra.mxu1 %v1308_v10  ;;  %990 = vmatprep.mubr.msk.bf16.mxu1 %vm1172_vm0, %v1168_v8  ;;  %v576_v32 = vshll.u32 %v873_v21, 16  ;;  %v569_v36 = vrot.slane %v873_v21, 1  ;;  %v646_v37 = vshrl.u32 %v876_v16, 16  ;;  %v650_v38 = vrot.slane %v648_v26, 1 }
  0x1d   :  { %984 = vmatprep.subr.bf16.mxu1 %v1168_v8  ;;  %965 = vmatpush3.bf16.msra.mxu0 %v1330_v23  ;;  %v736_v39 = vshll.u32 %v880_v27, 16  ;;  %v491_v41 = vor.u32 %v490_v29, %v487_v28  ;;  %v575_v42 = vrot.slane %v573_v31, 1  ;;  %v877_v44 = vcombine.low %v1298_v62, %v875_v34 }
  0x1e   :  { %476 = vrot.lane.b32.xlu0 %v475_v14, %s1170_s29  ;;  %966 = vmatprep.subr.bf16.mxu0 %v1168_v8  ;;  %v578_v43 = vrot.slane %v576_v32, 2  ;;  %v651_v47 = vor.u32 %v650_v38, %v646_v37  ;;  %v734_v48 = vshrl.u32 %v880_v27, 16  ;;  %v881_v55 = vcombine.low %v1324_v22, %v879_v46 }
  0x1f   :  { %404 = vrot.lane.b32.xlu1 %v403_v18, %s1171_s9  ;;  %v738_v49 = vrot.slane %v736_v39, 1  ;;  %v661_v53 = vshrl.u32 %v877_v44, 16  ;;  %v664_v54 = vshll.u32 %v877_v44, 16  ;;  %v657_v57 = vrot.slane %v877_v44, 1 }
  0x20   :  { %985 = vmatpush3.bf16.msra.mxu1 %v1330_v23  ;;  %v579_v52 = vor.u32 %v578_v43, %v575_v42  ;;  %v749_v61 = vshrl.u32 %v881_v55, 16  ;;  %v752_v63 = vshll.u32 %v881_v55, 16  ;;  %v745_v1 = vrot.slane %v881_v55, 1 }
  0x21   :  { %986 = vmatprep.subr.bf16.mxu1 %v1168_v8  ;;  %967 = vmatpush3.bf16.msra.mxu0 %v1347_v33  ;;  %v739_v58 = vor.u32 %v738_v49, %v734_v48  ;;  %v663_v59 = vrot.slane %v661_v53, 1  ;;  %v666_v60 = vrot.slane %v664_v54, 2  ;;  %vm84_vm1 = vcmask 261120  }
  0x22   :  { %564 = vrot.lane.b32.xlu0 %v563_v25, %s1170_s29  ;;  %968 = vmatprep.subr.bf16.mxu0 %v1168_v8  ;;  %v751_v4 = vrot.slane %v749_v61, 1  ;;  %v754_v5 = vrot.slane %v752_v63, 2  ;;  %vm88_vm2 = vcmask 523264   ;;  %vm91_vm3 = vcmask 785408  }
  0x23   :  { %482 = vrot.lane.b32.xlu1 %v481_v24, %s1169_s24  ;;  %v667_v2 = vor.u32 %v666_v60, %v663_v59 }
  0x24   :  { %987 = vmatpush3.bf16.msra.mxu1 %v1347_v33  ;;  %v755_v6 = vor.u32 %v754_v5, %v751_v4 }
  0x25   :  { %988 = vmatprep.subr.bf16.mxu1 %v1168_v8  ;;  %969 = vmatpush3.bf16.msra.mxu0 %v1362_v45 }
  0x26   :  { %570 = vrot.lane.b32.xlu0 %v569_v36, %s1169_s24  ;;  %994 = vmatprep.subr.bf16.mxu0 %v1168_v8 }
  0x27   :  { %492 = vrot.lane.b32.xlu1 %v491_v41, %s1171_s9 }
  0x28   :  { %989 = vmatpush3.bf16.msra.mxu1 %v1362_v45 }
  0x29   :  { %1014 = vmatprep.subr.bf16.mxu1 %v1168_v8 }
  0x2a   :  { %652 = vrot.lane.b32.xlu0 %v651_v47, %s1170_s29 }
  0x2b   :  { %580 = vrot.lane.b32.xlu1 %v579_v52, %s1171_s9 }
  0x2e   :  { %740 = vrot.lane.b32.xlu0 %v739_v58, %s1170_s29 }
  0x2f   :  { %658 = vrot.lane.b32.xlu1 %v657_v57, %s1169_s24 }
  0x32   :  { %746 = vrot.lane.b32.xlu0 %v745_v1, %s1169_s24 }
  0x33   :  { %668 = vrot.lane.b32.xlu1 %v667_v2, %s1171_s9 }
  0x37   :  { %756 = vrot.lane.b32.xlu1 %v755_v6, %s1171_s9 }
  0x78   :  { %v73_v7 = vpop.permute.xlu0 %72 }
  0x7c   :  { %v67_v9 = vpop.permute.xlu0 %66 }
  0x7d   :  { %v213_v11 = vpop.permute.xlu1 %212  ;;  %v87_v12 = vsel %vm84_vm1, %v1197_v0, %v67_v9 }
  0x7e   :  { %v90_v16 = vsel %vm88_vm2, %v87_v12, %v73_v7  ;;  %v232_v19 = vsel %vm84_vm1, %v1206_v3, %v213_v11 }
  0x80   :  { %v219_v14 = vpop.permute.xlu0 %218 }
  0x81   :  { %v83_v15 = vpop.permute.xlu1 %82  ;;  %v234_v0 = vsel %vm88_vm2, %v232_v19, %v219_v14 }
  0x82   :  { %v93_v18 = vsel %vm91_vm3, %v90_v16, %v83_v15 }
  0x83   :  { %971 = vmatmul.mubr.bf16.vlgmr.msra.gmra.mrb[0].mxu0 %v93_v18 }
  0x84   :  { %995 = vmatpush3.bf16.msra.mxu0 %v1239_v30  ;;  %v301_v20 = vpop.permute.xlu0 %300  ;;  %1010 = vmatprep.mubr.msk.bf16.mxu0 %vm1172_vm0, %v1168_v8 }
  0x85   :  { %v229_v21 = vpop.permute.xlu1 %228  ;;  %996 = vmatprep.subr.bf16.mxu0 %v1168_v8  ;;  %v320_v42 = vsel %vm84_vm1, %v1221_v13, %v301_v20 }
  0x86   :  { %v236_v24 = vsel %vm91_vm3, %v234_v0, %v229_v21 }
  0x87   :  { %991 = vmatmul.mubr.bf16.vlgmr.msra.gmra.mrb[0].mxu1 %v236_v24 }
  0x88   :  { %997 = vmatpush3.bf16.msra.mxu0 %v1253_v40  ;;  %1015 = vmatpush3.bf16.msra.mxu1 %v1239_v30  ;;  %v389_v25 = vpop.permute.xlu0 %388 }
  0x89   :  { %998 = vmatprep.subr.bf16.mxu0 %v1168_v8  ;;  %1016 = vmatprep.subr.bf16.mxu1 %v1168_v8  ;;  %v307_v3 = vpop.permute.xlu1 %306  ;;  %v408_v13 = vsel %vm84_vm1, %v1226_v17, %v389_v25 }
  0x8a   :  { %1030 = vmatprep.mubr.msk.bf16.mxu1 %vm1172_vm0, %v1168_v8  ;;  %v322_v46 = vsel %vm88_vm2, %v320_v42, %v307_v3 }
  0x8c   :  { %999 = vmatpush3.bf16.msra.mxu0 %v1275_v51  ;;  %1017 = vmatpush3.bf16.msra.mxu1 %v1253_v40  ;;  %v395_v26 = vpop.permute.xlu0 %394 }
  0x8d   :  { %1000 = vmatprep.subr.bf16.mxu0 %v1168_v8  ;;  %1018 = vmatprep.subr.bf16.mxu1 %v1168_v8  ;;  %v317_v27 = vpop.permute.xlu1 %316  ;;  %v410_v54 = vsel %vm88_vm2, %v408_v13, %v395_v26 }
  0x8e   :  { %v324_v52 = vsel %vm91_vm3, %v322_v46, %v317_v27 }
  0x90   :  { %1001 = vmatpush3.bf16.msra.mxu0 %v1286_v56  ;;  %1019 = vmatpush3.bf16.msra.mxu1 %v1275_v51  ;;  %v477_v28 = vpop.permute.xlu0 %476 }
  0x91   :  { %1002 = vmatprep.subr.bf16.mxu0 %v1168_v8  ;;  %1020 = vmatprep.subr.bf16.mxu1 %v1168_v8  ;;  %v405_v29 = vpop.permute.xlu1 %404  ;;  %v496_v31 = vsel %vm84_vm1, %v1246_v35, %v477_v28 }
  0x92   :  { %v412_v58 = vsel %vm91_vm3, %v410_v54, %v405_v29 }
  0x94   :  { %1003 = vmatpush3.bf16.msra.mxu0 %v1308_v10  ;;  %1021 = vmatpush3.bf16.msra.mxu1 %v1286_v56  ;;  %v565_v32 = vpop.permute.xlu0 %564 }
  0x95   :  { %1004 = vmatprep.subr.bf16.mxu0 %v1168_v8  ;;  %1022 = vmatprep.subr.bf16.mxu1 %v1168_v8  ;;  %v483_v34 = vpop.permute.xlu1 %482  ;;  %v584_v37 = vsel %vm84_vm1, %v1269_v50, %v565_v32 }
  0x96   :  { %v498_v36 = vsel %vm88_vm2, %v496_v31, %v483_v34 }
  0x98   :  { %1005 = vmatpush3.bf16.msra.mxu0 %v1330_v23  ;;  %1023 = vmatpush3.bf16.msra.mxu1 %v1308_v10  ;;  %v571_v35 = vpop.permute.xlu0 %570 }
  0x99   :  { %1006 = vmatprep.subr.bf16.mxu0 %v1168_v8  ;;  %1024 = vmatprep.subr.bf16.mxu1 %v1168_v8  ;;  %v493_v38 = vpop.permute.xlu1 %492  ;;  %v586_v39 = vsel %vm88_vm2, %v584_v37, %v571_v35 }
  0x9a   :  { %v1425_v41 = vsel %vm91_vm3, %v498_v36, %v493_v38 }
  0x9c   :  { %1007 = vmatpush3.bf16.msra.mxu0 %v1347_v33  ;;  %1025 = vmatpush3.bf16.msra.mxu1 %v1330_v23  ;;  %v653_v50 = vpop.permute.xlu0 %652 }
  0x9d   :  { %1008 = vmatprep.subr.bf16.mxu0 %v1168_v8  ;;  %1026 = vmatprep.subr.bf16.mxu1 %v1168_v8  ;;  %v581_v43 = vpop.permute.xlu1 %580  ;;  %v672_v47 = vsel %vm84_vm1, %v1298_v62, %v653_v50 }
  0x9e   :  { %v1434_v44 = vsel %vm91_vm3, %v586_v39, %v581_v43 }
  0xa0   :  { %1009 = vmatpush3.bf16.msra.mxu0 %v1362_v45  ;;  %1027 = vmatpush3.bf16.msra.mxu1 %v1347_v33  ;;  %v741_v48 = vpop.permute.xlu0 %740 }
  0xa1   :  { %1028 = vmatprep.subr.bf16.mxu1 %v1168_v8  ;;  %1034 = vmatprep.subr.bf16.mxu0 %v1168_v8  ;;  %v659_v49 = vpop.permute.xlu1 %658  ;;  %v760_v62 = vsel %vm84_vm1, %v1324_v22, %v741_v48 }
  0xa2   :  { %v674_v53 = vsel %vm88_vm2, %v672_v47, %v659_v49 }
  0xa3   :  { %1011 = vmatmul.mubr.bf16.vlgmr.msra.gmra.mrb[4].mxu0 %v324_v52 }
  0xa4   :  { %1029 = vmatpush3.bf16.msra.mxu1 %v1362_v45  ;;  %1035 = vmatpush3.bf16.msra.mxu0 %v1239_v30  ;;  %v747_v17 = vpop.permute.xlu0 %746 }
  0xa5   :  { %1036 = vmatprep.subr.bf16.mxu0 %v1168_v8  ;;  %1054 = vmatprep.subr.bf16.mxu1 %v1168_v8  ;;  %v669_v55 = vpop.permute.xlu1 %668  ;;  %v762_v57 = vsel %vm88_vm2, %v760_v62, %v747_v17 }
  0xa6   :  { %1050 = vmatprep.mubr.msk.bf16.mxu0 %vm1172_vm0, %v1168_v8  ;;  %v1459_v22 = vsel %vm91_vm3, %v674_v53, %v669_v55 }
  0xa7   :  { %1031 = vmatmul.mubr.bf16.vlgmr.msra.gmra.mrb[4].mxu1 %v412_v58 }
  0xa8   :  { %1037 = vmatpush3.bf16.msra.mxu0 %v1253_v40  ;;  %1055 = vmatpush3.bf16.msra.mxu1 %v1239_v30 }
  0xa9   :  { %1038 = vmatprep.subr.bf16.mxu0 %v1168_v8  ;;  %1056 = vmatprep.subr.bf16.mxu1 %v1168_v8  ;;  %v757_v59 = vpop.permute.xlu1 %756 }
  0xaa   :  { %1070 = vmatprep.mubr.msk.bf16.mxu1 %vm1172_vm0, %v1168_v8  ;;  %v764_v60 = vsel %vm91_vm3, %v762_v57, %v757_v59  ;;  %vm191_vm3 = vcmask 1046528  }
  0xac   :  { %1039 = vmatpush3.bf16.msra.mxu0 %v1275_v51  ;;  %1057 = vmatpush3.bf16.msra.mxu1 %v1253_v40 }
  0xad   :  { %1040 = vmatprep.subr.bf16.mxu0 %v1168_v8  ;;  %1058 = vmatprep.subr.bf16.mxu1 %v1168_v8 }
  0xb0   :  { %1041 = vmatpush3.bf16.msra.mxu0 %v1286_v56  ;;  %1059 = vmatpush3.bf16.msra.mxu1 %v1275_v51 }
  0xb1   :  { %1042 = vmatprep.subr.bf16.mxu0 %v1168_v8  ;;  %1060 = vmatprep.subr.bf16.mxu1 %v1168_v8 }
  0xb4   :  { %1043 = vmatpush3.bf16.msra.mxu0 %v1308_v10  ;;  %1061 = vmatpush3.bf16.msra.mxu1 %v1286_v56 }
  0xb5   :  { %1044 = vmatprep.subr.bf16.mxu0 %v1168_v8  ;;  %1062 = vmatprep.subr.bf16.mxu1 %v1168_v8 }
  0xb8   :  { %1045 = vmatpush3.bf16.msra.mxu0 %v1330_v23  ;;  %1063 = vmatpush3.bf16.msra.mxu1 %v1308_v10 }
  0xb9   :  { %1046 = vmatprep.subr.bf16.mxu0 %v1168_v8  ;;  %1064 = vmatprep.subr.bf16.mxu1 %v1168_v8 }
  0xbc   :  { %1047 = vmatpush3.bf16.msra.mxu0 %v1347_v33  ;;  %1065 = vmatpush3.bf16.msra.mxu1 %v1330_v23 }
  0xbd   :  { %1048 = vmatprep.subr.bf16.mxu0 %v1168_v8  ;;  %1066 = vmatprep.subr.bf16.mxu1 %v1168_v8 }
  0xc0   :  { %1049 = vmatpush3.bf16.msra.mxu0 %v1362_v45  ;;  %1067 = vmatpush3.bf16.msra.mxu1 %v1347_v33 }
  0xc1   :  { %1068 = vmatprep.subr.bf16.mxu1 %v1168_v8  ;;  %1074 = vmatprep.subr.bf16.mxu0 %v1168_v8 }
  0xc3   :  { %1051 = vmatmul.mubr.bf16.vlgmr.msra.gmra.mrb[8].mxu0 %v1425_v41 }
  0xc4   :  { %1069 = vmatpush3.bf16.msra.mxu1 %v1362_v45  ;;  %1075 = vmatpush3.bf16.msra.mxu0 %v1239_v30 }
  0xc5   :  { %1076 = vmatprep.subr.bf16.mxu0 %v1168_v8  ;;  %1094 = vmatprep.subr.bf16.mxu1 %v1168_v8 }
  0xc6   :  { %1090 = vmatprep.mubr.msk.bf16.mxu0 %vm1172_vm0, %v1168_v8 }
  0xc7   :  { %1071 = vmatmul.mubr.bf16.vlgmr.msra.gmra.mrb[8].mxu1 %v1434_v44 }
  0xc8   :  { %1077 = vmatpush3.bf16.msra.mxu0 %v1253_v40  ;;  %1095 = vmatpush3.bf16.msra.mxu1 %v1239_v30  ;;  %v33_v30 = vlaneseq }
  0xc9   :  { %1078 = vmatprep.subr.bf16.mxu0 %v1168_v8  ;;  %1096 = vmatprep.subr.bf16.mxu1 %v1168_v8 }
  0xca   :  { %1110 = vmatprep.mubr.msk.bf16.mxu1 %vm1172_vm0, %v1168_v8 }
  0xcc   :  { %1079 = vmatpush3.bf16.msra.mxu0 %v1275_v51  ;;  %1097 = vmatpush3.bf16.msra.mxu1 %v1253_v40  ;;  %v36_v40 = vand.u32 127, %v33_v30 }
  0xcd   :  { %1080 = vmatprep.subr.bf16.mxu0 %v1168_v8  ;;  %1098 = vmatprep.subr.bf16.mxu1 %v1168_v8 }
  0xce   :  { %vm42_vm4 = vcmp.ge.s32.totalorder %v36_v40, 16  ;;  %vm43_vm5 = vcmp.lt.s32.totalorder %v36_v40, 32  ;;  %vm38_vm6 = vcmp.lt.s32.totalorder %v36_v40, 16  ;;  %vm48_vm10 = vcmp.ge.s32.totalorder %v36_v40, 32 }
  0xcf   :  { %vm44_vm8 = vmand %vm42_vm4, %vm43_vm5  ;;  %vm49_vm11 = vcmp.lt.s32.totalorder %v36_v40, 48  ;;  %vm815_vm4 = vcmask 1040384   ;;  %vm817_vm5 = vcmask 1041408  }
  0xd0   :  { %1081 = vmatpush3.bf16.msra.mxu0 %v1286_v56  ;;  %1099 = vmatpush3.bf16.msra.mxu1 %v1275_v51  ;;  %v34_v51 = vshrl.u32 %v33_v30, 7  ;;  %vm50_vm14 = vmand %vm48_vm10, %vm49_vm11 }
  0xd1   :  { %1082 = vmatprep.subr.bf16.mxu0 %v1168_v8  ;;  %1100 = vmatprep.subr.bf16.mxu1 %v1168_v8 }
  0xd2   :  { %vm40_vm7 = vcmp.lt.s32.totalorder %v34_v51, 7  ;;  %vm45_vm9 = vcmp.lt.s32.totalorder %v34_v51, 6  ;;  %vm51_vm15 = vcmp.lt.s32.totalorder %v34_v51, 5 }
  0xd3   :  { %vm41_vm12 = vmand %vm38_vm6, %vm40_vm7  ;;  %vm819_vm6 = vcmask 1042432   ;;  %vm821_vm7 = vcmask 1043456  }
  0xd4   :  { %1083 = vmatpush3.bf16.msra.mxu0 %v1308_v10  ;;  %1101 = vmatpush3.bf16.msra.mxu1 %v1286_v56  ;;  %vm46_vm13 = vmand %vm44_vm8, %vm45_vm9  ;;  %vm823_vm8 = vcmask 1044480   ;;  %vm825_vm9 = vcmask 1045504  }
  0xd5   :  { %1084 = vmatprep.subr.bf16.mxu0 %v1168_v8  ;;  %1102 = vmatprep.subr.bf16.mxu1 %v1168_v8  ;;  %vm47_vm0 = vmor %vm41_vm12, %vm46_vm13 }
  0xd6   :  { %vm52_vm1 = vmand %vm50_vm14, %vm51_vm15 }
  0xd7   :  { %vm1537_vm2 = vmor %vm47_vm0, %vm52_vm1 }
  0xd8   :  { %1085 = vmatpush3.bf16.msra.mxu0 %v1330_v23  ;;  %1103 = vmatpush3.bf16.msra.mxu1 %v1308_v10 }
  0xd9   :  { %1086 = vmatprep.subr.bf16.mxu0 %v1168_v8  ;;  %1104 = vmatprep.subr.bf16.mxu1 %v1168_v8 }
  0xdc   :  { %1087 = vmatpush3.bf16.msra.mxu0 %v1347_v33  ;;  %1105 = vmatpush3.bf16.msra.mxu1 %v1330_v23 }
  0xdd   :  { %1088 = vmatprep.subr.bf16.mxu0 %v1168_v8  ;;  %1106 = vmatprep.subr.bf16.mxu1 %v1168_v8 }
  0xe0   :  { %1089 = vmatpush3.bf16.msra.mxu0 %v1362_v45  ;;  %1107 = vmatpush3.bf16.msra.mxu1 %v1347_v33 }
  0xe1   :  { %1108 = vmatprep.subr.bf16.mxu1 %v1168_v8  ;;  %v1534_v8 = vld [vmem:[%s1587_s2] ss:$0 sm:$0xff]  ;;  %s1173_s2 = smov [#allocation2]  }
  0xe2   :  { %s835_s24 = sshll.u32 %s1173_s2, 4  ;;  %s836_s24 = int_to_ptr.vmem [resolvable:$true] %s835_s24 }
  0xe3   :  { %1091 = vmatmul.mubr.bf16.vlgmr.msra.gmra.mrb[12].mxu0 %v1459_v22  ;;  %s1144_s29 = scalar_lea.vmem %s836_s24, 128  ;;  %p1149_p1 = scmp.lt.s32.totalorder %s836_s24, %s836_s24 }
  0xe4   :  { %1109 = vmatpush3.bf16.msra.mxu1 %v1362_v45  ;;  %p1145_p0 = scmp.ne.s32.totalorder %s836_s24, %s1144_s29  ;;  %p1150_p2 = scmp.lt.s32.totalorder %s1144_s29, %s1144_s29 }
  0xe6   :  { %p1151_p3 = por %p1150_p2, %p1149_p1 }
  0xe7   :  { %1111 = vmatmul.mubr.bf16.vlgmr.msra.gmra.mrb[12].mxu1 %v764_v60 }
  0xe8   :  { %p1152_p4 = pnand %p1151_p3, %p1145_p0 }
 0x156   :  { %v183_v56 = vpop.f32.mrb[0].mxu0 }
 0x157   :  { %v184_v10 = vadd.f32 %v1534_v8, %v183_v56  ;;  %v972_v23 = vpop.f32.mrb[1].mxu0 }
 0x158   :  { %v186_v45 = vpop.f32.mrb[2].mxu0 }
 0x159   :  { %v189_v61 = vmax.f32 %v184_v10, 0.0  ;;  %v973_v63 = vpop.f32.mrb[3].mxu0 }
 0x15a   :  { %v272_v1 = vpop.f32.mrb[0].mxu1 }
 0x15b   :  { %v190_v2 = vsel %vm1537_vm2, %v189_v61, 0.0  ;;  %v273_v4 = vadd.f32 %v1534_v8, %v272_v1  ;;  %v992_v5 = vpop.f32.mrb[1].mxu1 }
 0x15c   :  { %v192_v6 = vsel %vm191_vm3, %v190_v2, -inf  ;;  %v275_v7 = vpop.f32.mrb[2].mxu1 }
 0x15d   :  { %v193_v9 = vrot.slane %v192_v6, 4  ;;  %v278_v11 = vmax.f32 %v273_v4, 0.0  ;;  %v993_v12 = vpop.f32.mrb[3].mxu1 }
 0x15f   :  { %v194_v14 = vmax.f32 %v192_v6, %v193_v9  ;;  %v279_v15 = vsel %vm1537_vm2, %v278_v11, 0.0 }
 0x160   :  { %v280_v16 = vsel %vm191_vm3, %v279_v15, -inf }
 0x161   :  { %v195_v18 = vrot.slane %v194_v14, 2  ;;  %v281_v19 = vrot.slane %v280_v16, 4 }
 0x163   :  { %v196_v20 = vmax.f32 %v194_v14, %v195_v18  ;;  %v282_v0 = vmax.f32 %v280_v16, %v281_v19 }
 0x165   :  { %v283_v21 = vrot.slane %v282_v0, 2  ;;  %v197_v24 = vrot.slane %v196_v20, 1 }
 0x167   :  { %v284_v25 = vmax.f32 %v282_v0, %v283_v21  ;;  %v198_v26 = vmax.f32 %v196_v20, %v197_v24 }
 0x169   :  { %v285_v3 = vrot.slane %v284_v25, 1 }
 0x16b   :  { %v286_v27 = vmax.f32 %v284_v25, %v285_v3 }
 0x16d   :  { %v816_v28 = vsel %vm815_vm4, %v198_v26, %v286_v27 }
 0x176   :  { %v360_v29 = vpop.f32.mrb[4].mxu0 }
 0x177   :  { %v361_v31 = vadd.f32 %v1534_v8, %v360_v29  ;;  %v1012_v32 = vpop.f32.mrb[5].mxu0 }
 0x178   :  { %v363_v34 = vpop.f32.mrb[6].mxu0 }
 0x179   :  { %v366_v36 = vmax.f32 %v361_v31, 0.0  ;;  %v1013_v37 = vpop.f32.mrb[7].mxu0 }
 0x17a   :  { %v448_v35 = vpop.f32.mrb[4].mxu1 }
 0x17b   :  { %v367_v38 = vsel %vm1537_vm2, %v366_v36, 0.0  ;;  %v449_v39 = vadd.f32 %v1534_v8, %v448_v35  ;;  %v1032_v41 = vpop.f32.mrb[5].mxu1 }
 0x17c   :  { %v368_v42 = vsel %vm191_vm3, %v367_v38, -inf  ;;  %v451_v50 = vpop.f32.mrb[6].mxu1 }
 0x17d   :  { %v369_v43 = vrot.slane %v368_v42, 4  ;;  %v454_v44 = vmax.f32 %v449_v39, 0.0  ;;  %v1033_v46 = vpop.f32.mrb[7].mxu1 }
 0x17f   :  { %v370_v47 = vmax.f32 %v368_v42, %v369_v43  ;;  %v455_v13 = vsel %vm1537_vm2, %v454_v44, 0.0 }
 0x180   :  { %v456_v48 = vsel %vm191_vm3, %v455_v13, -inf }
 0x181   :  { %v371_v49 = vrot.slane %v370_v47, 2  ;;  %v457_v52 = vrot.slane %v456_v48, 4 }
 0x183   :  { %v372_v53 = vmax.f32 %v370_v47, %v371_v49  ;;  %v458_v62 = vmax.f32 %v456_v48, %v457_v52 }
 0x185   :  { %v373_v54 = vrot.slane %v372_v53, 1  ;;  %v459_v17 = vrot.slane %v458_v62, 2 }
 0x187   :  { %v374_v55 = vmax.f32 %v372_v53, %v373_v54  ;;  %v460_v57 = vmax.f32 %v458_v62, %v459_v17 }
 0x189   :  { %v461_v58 = vrot.slane %v460_v57, 1  ;;  %v818_v22 = vsel %vm817_vm5, %v816_v28, %v374_v55 }
 0x18b   :  { %v462_v59 = vmax.f32 %v460_v57, %v461_v58 }
 0x18d   :  { %v820_v60 = vsel %vm819_vm6, %v818_v22, %v462_v59 }
 0x196   :  { %v536_v30 = vpop.f32.mrb[8].mxu0 }
 0x197   :  { %v537_v40 = vadd.f32 %v1534_v8, %v536_v30  ;;  %v1052_v51 = vpop.f32.mrb[9].mxu0 }
 0x198   :  { %v539_v56 = vpop.f32.mrb[10].mxu0 }
 0x199   :  { %v542_v10 = vmax.f32 %v537_v40, 0.0  ;;  %v1053_v23 = vpop.f32.mrb[11].mxu0 }
 0x19a   :  { %v624_v45 = vpop.f32.mrb[8].mxu1 }
 0x19b   :  { %v543_v61 = vsel %vm1537_vm2, %v542_v10, 0.0  ;;  %v625_v63 = vadd.f32 %v1534_v8, %v624_v45  ;;  %v1072_v1 = vpop.f32.mrb[9].mxu1 }
 0x19c   :  { %v544_v2 = vsel %vm191_vm3, %v543_v61, -inf  ;;  %v627_v4 = vpop.f32.mrb[10].mxu1 }
 0x19d   :  { %v545_v5 = vrot.slane %v544_v2, 4  ;;  %v630_v6 = vmax.f32 %v625_v63, 0.0  ;;  %v1073_v7 = vpop.f32.mrb[11].mxu1 }
 0x19f   :  { %v546_v9 = vmax.f32 %v544_v2, %v545_v5  ;;  %v631_v11 = vsel %vm1537_vm2, %v630_v6, 0.0 }
 0x1a0   :  { %v632_v12 = vsel %vm191_vm3, %v631_v11, -inf }
 0x1a1   :  { %v547_v14 = vrot.slane %v546_v9, 2  ;;  %v633_v15 = vrot.slane %v632_v12, 4 }
 0x1a3   :  { %v548_v16 = vmax.f32 %v546_v9, %v547_v14  ;;  %v634_v18 = vmax.f32 %v632_v12, %v633_v15 }
 0x1a5   :  { %v549_v19 = vrot.slane %v548_v16, 1  ;;  %v635_v20 = vrot.slane %v634_v18, 2 }
 0x1a7   :  { %v550_v0 = vmax.f32 %v548_v16, %v549_v19  ;;  %v636_v21 = vmax.f32 %v634_v18, %v635_v20 }
 0x1a9   :  { %v637_v24 = vrot.slane %v636_v21, 1  ;;  %v822_v25 = vsel %vm821_vm7, %v820_v60, %v550_v0 }
 0x1ab   :  { %v638_v3 = vmax.f32 %v636_v21, %v637_v24 }
 0x1ad   :  { %v824_v26 = vsel %vm823_vm8, %v822_v25, %v638_v3 }
 0x1b6   :  { %v712_v27 = vpop.f32.mrb[12].mxu0 }
 0x1b7   :  { %v713_v28 = vadd.f32 %v1534_v8, %v712_v27  ;;  %v1092_v29 = vpop.f32.mrb[13].mxu0 }
 0x1b8   :  { %v715_v31 = vpop.f32.mrb[14].mxu0 }
 0x1b9   :  { %v718_v32 = vmax.f32 %v713_v28, 0.0  ;;  %v1093_v34 = vpop.f32.mrb[15].mxu0 }
 0x1ba   :  { %v800_v36 = vpop.f32.mrb[12].mxu1 }
 0x1bb   :  { %v719_v37 = vsel %vm1537_vm2, %v718_v32, 0.0  ;;  %v801_v35 = vadd.f32 %v1534_v8, %v800_v36  ;;  %v1112_v38 = vpop.f32.mrb[13].mxu1 }
 0x1bc   :  { %v720_v39 = vsel %vm191_vm3, %v719_v37, -inf  ;;  %v803_v41 = vpop.f32.mrb[14].mxu1 }
 0x1bd   :  { %v721_v42 = vrot.slane %v720_v39, 4  ;;  %v806_v50 = vmax.f32 %v801_v35, 0.0  ;;  %v1113_v43 = vpop.f32.mrb[15].mxu1 }
 0x1bf   :  { %v722_v44 = vmax.f32 %v720_v39, %v721_v42  ;;  %v807_v46 = vsel %vm1537_vm2, %v806_v50, 0.0 }
 0x1c0   :  { %v808_v47 = vsel %vm191_vm3, %v807_v46, -inf }
 0x1c1   :  { %v723_v13 = vrot.slane %v722_v44, 2  ;;  %v809_v48 = vrot.slane %v808_v47, 4 }
 0x1c3   :  { %v724_v49 = vmax.f32 %v722_v44, %v723_v13  ;;  %v810_v52 = vmax.f32 %v808_v47, %v809_v48 }
 0x1c5   :  { %v725_v53 = vrot.slane %v724_v49, 1  ;;  %v811_v62 = vrot.slane %v810_v52, 2 }
 0x1c7   :  { %v812_v8 = vmax.f32 %v810_v52, %v811_v62  ;;  %v726_v54 = vmax.f32 %v724_v49, %v725_v53 }
 0x1c9   :  { %v813_v17 = vrot.slane %v812_v8, 1  ;;  %v826_v55 = vsel %vm825_vm9, %v824_v26, %v726_v54 }
 0x1cb   :  { %v814_v57 = vmax.f32 %v812_v8, %v813_v17 }
 0x1cd   :  { %v827_v33 = vsel %vm191_vm3, %v826_v55, %v814_v57 }
 0x1ce   :  { %828 = vst [vmem:[#allocation2] sm:$0xff] %v827_v33 }
 0x1cf   :  { %1155 = shalt.err (!%p1152_p4)
}
 0x1d0   :  { %s1156_s13 = scalar_lea.hbm %s1588_s3, 128 }
 0x1d1   :  { %p1157_p5 = scmp.ne.s32.totalorder %s1588_s3, %s1156_s13  ;;  %p1160_p6 = scmp.lt.u32.totalorder %s1156_s13, %s1588_s3 }
 0x1d3   :  { %p1162_p7 = pnand %p1160_p6, %p1157_p5 }
 0x1d5   :  { %1165 = shalt.err (!%p1162_p7)
}
 0x1d6   :  { %838 = dma.vmem_to_hbm [thread:$0]  %s836_s24, 128, %s1588_s3, [#allocation3]  }
 0x1d7   :  { %1166 = dma.done.wait [#allocation3], 128  }
 0x1d8   :  { %1167 = vsyncadd [#allocation3], 4294967168 }
 0x1d9   :  { %842 = vsyncpa [#allocation3], 1 }

</bundles_post_ra>
